<compile_context>
chip_gen: v5e
topology: v5e:2x2
jax: 0.10.0
libtpu: 0.0.40
codegen_flags: <defaults>
</compile_context>

<pallas_src>
import functools

import jax
import jax.numpy as jnp
from jax import lax
from jax.experimental import pallas as pl
from jax.experimental.pallas import tpu as pltpu

LN_EPS = 1e-5


def _layer_norm(x, gamma, beta):
    # x: (rows, D) f32, gamma/beta: (1, D) f32
    mu = jnp.mean(x, axis=-1, keepdims=True)
    var = jnp.mean((x - mu) ** 2, axis=-1, keepdims=True)
    xn = (x - mu) * lax.rsqrt(var + LN_EPS)
    return xn * gamma + beta


def _gelu_exact(x):
    # PyTorch F.gelu default (erf-based, not tanh approximation); f32 VPU/EUP math.
    return 0.5 * x * (1.0 + lax.erf(x * (1.0 / jnp.sqrt(2.0).astype(x.dtype))))


def transformer_layer_kernel(
    x_ref,
    g1_ref, be1_ref,
    wqkv_ref, bqkv_ref,
    wo_ref, bo_ref,
    g2_ref, be2_ref,
    w1_ref, b1_ref,
    w2_ref, b2_ref,
    o_ref,
    *, num_heads, block_q, compute_dtype,
):
    x = x_ref[0].astype(jnp.float32)          # (S, D)
    S, D = x.shape
    H = num_heads
    d_k = D // H
    scale = jnp.float32(d_k) ** -0.5

    # ---- pre-LN 1 over the full sequence (K/V need every row) ----
    xn = _layer_norm(x, g1_ref[...], be1_ref[...])          # (S, D) f32
    xn_c = xn.astype(compute_dtype)

    w_qkv = wqkv_ref[...].astype(compute_dtype)             # (D, 3D)
    b_qkv = bqkv_ref[...]                                   # (1, 3D) f32

    # Fused K/V projection over the full sequence: one (D, 2D) matmul.
    kv = jnp.dot(xn_c, w_qkv[:, D:], preferred_element_type=jnp.float32) + b_qkv[:, D:]
    k = kv[:, :D]                                           # (S, D) f32
    v = kv[:, D:]                                           # (S, D) f32

    # Query tile of this grid step (block_q rows).
    if block_q == S:
        xn_q = xn_c
        x_tile = x
    else:
        q_start = pl.multiple_of(pl.program_id(1) * block_q, block_q)
        xn_q = lax.dynamic_slice_in_dim(xn_c, q_start, block_q, axis=0)
        x_tile = lax.dynamic_slice_in_dim(x, q_start, block_q, axis=0)

    # Q projection on the tile only; fold the 1/sqrt(d_k) scale into q.
    q = (jnp.dot(xn_q, w_qkv[:, :D], preferred_element_type=jnp.float32)
         + b_qkv[:, :D]) * scale                            # (TQ, D) f32

    # ---- head-batched attention (H is the batch dim of the contraction) ----
    qh = q.reshape(block_q, H, d_k).transpose(1, 0, 2)      # (H, TQ, d_k)
    kh = k.reshape(S, H, d_k).transpose(1, 0, 2)            # (H, S,  d_k)
    vh = v.reshape(S, H, d_k).transpose(1, 0, 2)            # (H, S,  d_k)

    s = jnp.einsum("hqd,hkd->hqk",
                   qh.astype(compute_dtype), kh.astype(compute_dtype),
                   preferred_element_type=jnp.float32)      # (H, TQ, S)
    # softmax (mask=None path), statistics in f32
    m = jnp.max(s, axis=-1, keepdims=True)
    p = jnp.exp(s - m)
    p = p * pl.reciprocal(jnp.sum(p, axis=-1, keepdims=True), approx=True)

    ctx = jnp.einsum("hqk,hkd->hqd",
                     p.astype(compute_dtype), vh.astype(compute_dtype),
                     preferred_element_type=jnp.float32)    # (H, TQ, d_k)
    ctx = ctx.transpose(1, 0, 2).reshape(block_q, D)        # lane-dense (TQ, D)

    attn = jnp.dot(ctx.astype(compute_dtype), wo_ref[...].astype(compute_dtype),
                   preferred_element_type=jnp.float32) + bo_ref[...]

    x1 = x_tile + attn                                      # residual 1 (dropout = identity)

    # ---- pre-LN 2 + feed-forward on the tile ----
    xn2 = _layer_norm(x1, g2_ref[...], be2_ref[...]).astype(compute_dtype)
    h1 = jnp.dot(xn2, w1_ref[...].astype(compute_dtype),
                 preferred_element_type=jnp.float32) + b1_ref[...]
    h1 = _gelu_exact(h1)                                    # exact erf GELU in f32
    ff = jnp.dot(h1.astype(compute_dtype), w2_ref[...].astype(compute_dtype),
                 preferred_element_type=jnp.float32) + b2_ref[...]

    o_ref[0] = (x1 + ff).astype(o_ref.dtype)                # residual 2 (dropout = identity)


def transformer_layer(x, params, num_heads, *, block_q=None, compute_dtype=None):
    B, S, D = x.shape
    assert D % num_heads == 0, "d_model must be divisible by num_heads"

    if compute_dtype is None:
        compute_dtype = x.dtype          # keep f32 semantics by default; pass bf16 for MXU speed
    if block_q is None:
        block_q = min(S, 256)
    if S % block_q != 0:
        block_q = S
    num_q_tiles = S // block_q

    # Host-side fusion of the Q/K/V projection parameters: one weight block in VMEM.
    w_qkv = jnp.concatenate([params["wq"], params["wk"], params["wv"]], axis=1)   # (D, 3D)
    b_qkv = jnp.concatenate([params["bq"], params["bk"], params["bv"]], axis=1)   # (1, 3D)

    ordered = [
        params["ln1_g"], params["ln1_b"],
        w_qkv, b_qkv,
        params["wo"], params["bo"],
        params["ln2_g"], params["ln2_b"],
        params["w1"], params["b1"],
        params["w2"], params["b2"],
    ]

    def full_spec(arr):
        nd = arr.ndim
        return pl.BlockSpec(arr.shape, lambda b, qt, _nd=nd: (0,) * _nd)

    kernel = functools.partial(
        transformer_layer_kernel,
        num_heads=num_heads, block_q=block_q, compute_dtype=compute_dtype)

    return pl.pallas_call(
        kernel,
        out_shape=jax.ShapeDtypeStruct((B, S, D), x.dtype),
        grid_spec=pltpu.PrefetchScalarGridSpec(
            num_scalar_prefetch=0,
            grid=(B, num_q_tiles),
            in_specs=[pl.BlockSpec((1, S, D), lambda b, qt: (b, 0, 0))]
            + [full_spec(a) for a in ordered],
            out_specs=pl.BlockSpec((1, block_q, D), lambda b, qt: (b, qt, 0)),
        ),
        compiler_params=pltpu.CompilerParams(
            dimension_semantics=("parallel", "parallel"),
            vmem_limit_bytes=48 * 1024 * 1024,
        ),
    )(x, *ordered)


def reference(x, p, num_heads):
    B, S, D = x.shape
    d_k = D // num_heads

    def ln(x, g, b):
        mu = jnp.mean(x, -1, keepdims=True)
        var = jnp.mean((x - mu) ** 2, -1, keepdims=True)
        return (x - mu) / jnp.sqrt(var + LN_EPS) * g + b

    xn = ln(x, p["ln1_g"], p["ln1_b"])
    q = xn @ p["wq"] + p["bq"]
    k = xn @ p["wk"] + p["bk"]
    v = xn @ p["wv"] + p["bv"]
    q = q.reshape(B, S, num_heads, d_k).transpose(0, 2, 1, 3)
    k = k.reshape(B, S, num_heads, d_k).transpose(0, 2, 1, 3)
    v = v.reshape(B, S, num_heads, d_k).transpose(0, 2, 1, 3)
    s = jnp.einsum("bhqd,bhkd->bhqk", q, k) * (d_k ** -0.5)
    a = jax.nn.softmax(s, axis=-1)
    o = jnp.einsum("bhqk,bhkd->bhqd", a, v).transpose(0, 2, 1, 3).reshape(B, S, D)
    o = o @ p["wo"] + p["bo"]
    x1 = x + o
    xn2 = ln(x1, p["ln2_g"], p["ln2_b"])
    h = jax.nn.gelu(xn2 @ p["w1"] + p["b1"], approximate=False)
    return x1 + (h @ p["w2"] + p["b2"])


def init_params(key, d_model, num_heads, d_ff):
    keys = jax.random.split(key, 8)
    s = 0.05

    def w(k, shape):
        return jax.random.normal(k, shape, jnp.float32) * s

    return {
        "ln1_g": jnp.ones((1, d_model), jnp.float32),
        "ln1_b": jnp.zeros((1, d_model), jnp.float32),
        "ln2_g": jnp.ones((1, d_model), jnp.float32),
        "ln2_b": jnp.zeros((1, d_model), jnp.float32),
        "wq": w(keys[0], (d_model, d_model)), "bq": jnp.zeros((1, d_model), jnp.float32),
        "wk": w(keys[1], (d_model, d_model)), "bk": jnp.zeros((1, d_model), jnp.float32),
        "wv": w(keys[2], (d_model, d_model)), "bv": jnp.zeros((1, d_model), jnp.float32),
        "wo": w(keys[3], (d_model, d_model)), "bo": jnp.zeros((1, d_model), jnp.float32),
        "w1": w(keys[4], (d_model, d_ff)),   "b1": jnp.zeros((1, d_ff), jnp.float32),
        "w2": w(keys[5], (d_ff, d_model)),   "b2": jnp.zeros((1, d_model), jnp.float32),
    }


if __name__ == "__main__":
    B, S, D, H, FF = 2, 8, 32, 4, 64
    key = jax.random.PRNGKey(0)
    kx, kp = jax.random.split(key)
    x = jax.random.normal(kx, (B, S, D), jnp.float32)
    params = init_params(kp, D, H, FF)

    ref = reference(x, params, H)

    # f32 path: preserves the PyTorch module's numerics.
    out = transformer_layer(x, params, H)
    out = jax.block_until_ready(out)
    assert out.shape == (B, S, D)
    assert jnp.allclose(out, ref, rtol=2e-3, atol=2e-3), "f32 mismatch vs reference"

    # bf16-MXU path: matmul operands in bf16, f32 accumulation + f32 LN/softmax/GELU.
    out_bf16 = transformer_layer(x, params, H, compute_dtype=jnp.bfloat16)
    out_bf16 = jax.block_until_ready(out_bf16)
    assert jnp.allclose(out_bf16, ref, rtol=5e-2, atol=5e-2), "bf16 mismatch vs reference"

    print("KERNEL_OK")
</pallas_src>

<mosaic_0001>
module attributes {stable_mosaic.version = 11 : i64} {
  func.func @transformer_layer_kernel(%arg0: i32, %arg1: i32, %arg2: memref<1x8x32xf32, #tpu.memory_space<vmem>>, %arg3: memref<1x32xf32, #tpu.memory_space<vmem>>, %arg4: memref<1x32xf32, #tpu.memory_space<vmem>>, %arg5: memref<32x96xf32, #tpu.memory_space<vmem>>, %arg6: memref<1x96xf32, #tpu.memory_space<vmem>>, %arg7: memref<32x32xf32, #tpu.memory_space<vmem>>, %arg8: memref<1x32xf32, #tpu.memory_space<vmem>>, %arg9: memref<1x32xf32, #tpu.memory_space<vmem>>, %arg10: memref<1x32xf32, #tpu.memory_space<vmem>>, %arg11: memref<32x64xf32, #tpu.memory_space<vmem>>, %arg12: memref<1x64xf32, #tpu.memory_space<vmem>>, %arg13: memref<64x32xf32, #tpu.memory_space<vmem>>, %arg14: memref<1x32xf32, #tpu.memory_space<vmem>>, %arg15: memref<1x8x32xf32, #tpu.memory_space<vmem>>) attributes {dimension_semantics = [#tpu.dimension_semantics<parallel>, #tpu.dimension_semantics<parallel>], iteration_bounds = array<i64: 2, 1>, scalar_prefetch = 0 : i64, scratch_operands = 0 : i64, tpu.core_type = #tpu.core_type<tc>, window_params = [{transform_indices = @transform_0, window_bounds = array<i64: 1, 8, 32>}, {pipeline_mode = #tpu.pipeline_mode<synchronous>, transform_indices = @transform_1, window_bounds = array<i64: 1, 32>}, {pipeline_mode = #tpu.pipeline_mode<synchronous>, transform_indices = @transform_2, window_bounds = array<i64: 1, 32>}, {pipeline_mode = #tpu.pipeline_mode<synchronous>, transform_indices = @transform_3, window_bounds = array<i64: 32, 96>}, {pipeline_mode = #tpu.pipeline_mode<synchronous>, transform_indices = @transform_4, window_bounds = array<i64: 1, 96>}, {pipeline_mode = #tpu.pipeline_mode<synchronous>, transform_indices = @transform_5, window_bounds = array<i64: 32, 32>}, {pipeline_mode = #tpu.pipeline_mode<synchronous>, transform_indices = @transform_6, window_bounds = array<i64: 1, 32>}, {pipeline_mode = #tpu.pipeline_mode<synchronous>, transform_indices = @transform_7, window_bounds = array<i64: 1, 32>}, {pipeline_mode = #tpu.pipeline_mode<synchronous>, transform_indices = @transform_8, window_bounds = array<i64: 1, 32>}, {pipeline_mode = #tpu.pipeline_mode<synchronous>, transform_indices = @transform_9, window_bounds = array<i64: 32, 64>}, {pipeline_mode = #tpu.pipeline_mode<synchronous>, transform_indices = @transform_10, window_bounds = array<i64: 1, 64>}, {pipeline_mode = #tpu.pipeline_mode<synchronous>, transform_indices = @transform_11, window_bounds = array<i64: 64, 32>}, {pipeline_mode = #tpu.pipeline_mode<synchronous>, transform_indices = @transform_12, window_bounds = array<i64: 1, 32>}, {transform_indices = @transform_13, window_bounds = array<i64: 1, 8, 32>}]} {
    %c0 = arith.constant 0 : index
    %c0_0 = arith.constant 0 : index
    %c0_1 = arith.constant 0 : index
    %0 = vector.load %arg2[%c0, %c0_0, %c0_1] : memref<1x8x32xf32, #tpu.memory_space<vmem>>, vector<1x8x32xf32>
    %1 = vector.shape_cast %0 : vector<1x8x32xf32> to vector<8x32xf32>
    %cst = arith.constant 8.000000e+00 : f32
    %cst_2 = arith.constant -5.000000e-01 : f32
    %2 = math.powf %cst, %cst_2 : f32
    %c0_3 = arith.constant 0 : index
    %c0_4 = arith.constant 0 : index
    %3 = vector.load %arg3[%c0_3, %c0_4] : memref<1x32xf32, #tpu.memory_space<vmem>>, vector<1x32xf32>
    %c0_5 = arith.constant 0 : index
    %c0_6 = arith.constant 0 : index
    %4 = vector.load %arg4[%c0_5, %c0_6] : memref<1x32xf32, #tpu.memory_space<vmem>>, vector<1x32xf32>
    %cst_7 = arith.constant dense<0.000000e+00> : vector<8xf32>
    %5 = vector.multi_reduction <add>, %1, %cst_7 [1] : vector<8x32xf32> to vector<8xf32>
    %6 = vector.shape_cast %5 : vector<8xf32> to vector<8x1xf32>
    %cst_8 = arith.constant 3.200000e+01 : f32
    %7 = vector.broadcast %cst_8 : f32 to vector<8x1xf32>
    %8 = arith.divf %6, %7 : vector<8x1xf32>
    %9 = vector.broadcast %8 : vector<8x1xf32> to vector<8x32xf32>
    %10 = arith.subf %1, %9 : vector<8x32xf32>
    %11 = arith.mulf %10, %10 : vector<8x32xf32>
    %cst_9 = arith.constant dense<0.000000e+00> : vector<8xf32>
    %12 = vector.multi_reduction <add>, %11, %cst_9 [1] : vector<8x32xf32> to vector<8xf32>
    %13 = vector.shape_cast %12 : vector<8xf32> to vector<8x1xf32>
    %cst_10 = arith.constant 3.200000e+01 : f32
    %14 = vector.broadcast %cst_10 : f32 to vector<8x1xf32>
    %15 = arith.divf %13, %14 : vector<8x1xf32>
    %16 = vector.broadcast %8 : vector<8x1xf32> to vector<8x32xf32>
    %17 = arith.subf %1, %16 : vector<8x32xf32>
    %cst_11 = arith.constant 9.99999974E-6 : f32
    %18 = vector.broadcast %cst_11 : f32 to vector<8x1xf32>
    %19 = arith.addf %15, %18 : vector<8x1xf32>
    %20 = math.rsqrt %19 : vector<8x1xf32>
    %21 = vector.broadcast %20 : vector<8x1xf32> to vector<8x32xf32>
    %22 = arith.mulf %17, %21 : vector<8x32xf32>
    %23 = vector.broadcast %3 : vector<1x32xf32> to vector<8x32xf32>
    %24 = arith.mulf %22, %23 : vector<8x32xf32>
    %25 = vector.broadcast %4 : vector<1x32xf32> to vector<8x32xf32>
    %26 = arith.addf %24, %25 : vector<8x32xf32>
    %c0_12 = arith.constant 0 : index
    %c0_13 = arith.constant 0 : index
    %27 = vector.load %arg5[%c0_12, %c0_13] : memref<32x96xf32, #tpu.memory_space<vmem>>, vector<32x96xf32>
    %c0_14 = arith.constant 0 : index
    %c0_15 = arith.constant 0 : index
    %28 = vector.load %arg6[%c0_14, %c0_15] : memref<1x96xf32, #tpu.memory_space<vmem>>, vector<1x96xf32>
    %29 = vector.extract_strided_slice %27 {offsets = [0, 32], sizes = [32, 64], strides = [1, 1]} : vector<32x96xf32> to vector<32x64xf32>
    %cst_16 = arith.constant dense<0.000000e+00> : vector<8x64xf32>
    %30 = tpu.matmul %26, %29, %cst_16 {dimension_numbers = #tpu.dot_dimension_numbers<[1], [0], [0], [1], [0, 0, 1, 1], [], []>} : vector<8x32xf32>, vector<32x64xf32>, vector<8x64xf32> -> vector<8x64xf32>
    %31 = vector.extract_strided_slice %28 {offsets = [0, 32], sizes = [1, 64], strides = [1, 1]} : vector<1x96xf32> to vector<1x64xf32>
    %32 = vector.broadcast %31 : vector<1x64xf32> to vector<8x64xf32>
    %33 = arith.addf %30, %32 : vector<8x64xf32>
    %34 = vector.extract_strided_slice %33 {offsets = [0, 0], sizes = [8, 32], strides = [1, 1]} : vector<8x64xf32> to vector<8x32xf32>
    %35 = vector.extract_strided_slice %33 {offsets = [0, 32], sizes = [8, 32], strides = [1, 1]} : vector<8x64xf32> to vector<8x32xf32>
    %36 = vector.extract_strided_slice %27 {offsets = [0, 0], sizes = [32, 32], strides = [1, 1]} : vector<32x96xf32> to vector<32x32xf32>
    %cst_17 = arith.constant dense<0.000000e+00> : vector<8x32xf32>
    %37 = tpu.matmul %26, %36, %cst_17 {dimension_numbers = #tpu.dot_dimension_numbers<[1], [0], [0], [1], [0, 0, 1, 1], [], []>} : vector<8x32xf32>, vector<32x32xf32>, vector<8x32xf32> -> vector<8x32xf32>
    %38 = vector.extract_strided_slice %28 {offsets = [0, 0], sizes = [1, 32], strides = [1, 1]} : vector<1x96xf32> to vector<1x32xf32>
    %39 = vector.broadcast %38 : vector<1x32xf32> to vector<8x32xf32>
    %40 = arith.addf %37, %39 : vector<8x32xf32>
    %41 = vector.broadcast %2 : f32 to vector<8x32xf32>
    %42 = arith.mulf %40, %41 : vector<8x32xf32>
    %43 = vector.shape_cast %42 : vector<8x32xf32> to vector<8x4x8xf32>
    %44 = tpu.transpose %43, [1, 0, 2] : vector<8x4x8xf32> -> vector<4x8x8xf32>
    %45 = vector.shape_cast %34 : vector<8x32xf32> to vector<8x4x8xf32>
    %46 = tpu.transpose %45, [1, 0, 2] : vector<8x4x8xf32> -> vector<4x8x8xf32>
    %47 = vector.shape_cast %35 : vector<8x32xf32> to vector<8x4x8xf32>
    %48 = tpu.transpose %47, [1, 0, 2] : vector<8x4x8xf32> -> vector<4x8x8xf32>
    "tpu.trace_start"() <{level = 10 : i32, message = "hqd,hkd->hqk"}> : () -> ()
    %cst_18 = arith.constant dense<0.000000e+00> : vector<4x8x8xf32>
    %49 = tpu.matmul %44, %46, %cst_18 {dimension_numbers = #tpu.dot_dimension_numbers<[2], [2], [1], [1], [0, 0, 0, 1, 1, 1], [0], [0]>} : vector<4x8x8xf32>, vector<4x8x8xf32>, vector<4x8x8xf32> -> vector<4x8x8xf32>
    "tpu.trace_stop"() : () -> ()
    %cst_19 = arith.constant dense<0xFF800000> : vector<4x8xf32>
    %50 = vector.multi_reduction <maximumf>, %49, %cst_19 [2] : vector<4x8x8xf32> to vector<4x8xf32>
    %51 = vector.shape_cast %50 : vector<4x8xf32> to vector<4x8x1xf32>
    %52 = vector.broadcast %51 : vector<4x8x1xf32> to vector<4x8x8xf32>
    %53 = arith.subf %49, %52 : vector<4x8x8xf32>
    %54 = math.exp %53 : vector<4x8x8xf32>
    %cst_20 = arith.constant dense<0.000000e+00> : vector<4x8xf32>
    %55 = vector.multi_reduction <add>, %54, %cst_20 [2] : vector<4x8x8xf32> to vector<4x8xf32>
    %56 = vector.shape_cast %55 : vector<4x8xf32> to vector<4x8x1xf32>
    %57 = tpu.reciprocal %56 {approx = true} : vector<4x8x1xf32> -> vector<4x8x1xf32>
    %58 = vector.broadcast %57 : vector<4x8x1xf32> to vector<4x8x8xf32>
    %59 = arith.mulf %54, %58 : vector<4x8x8xf32>
    "tpu.trace_start"() <{level = 10 : i32, message = "hqk,hkd->hqd"}> : () -> ()
    %cst_21 = arith.constant dense<0.000000e+00> : vector<4x8x8xf32>
    %60 = tpu.matmul %59, %48, %cst_21 {dimension_numbers = #tpu.dot_dimension_numbers<[2], [1], [1], [2], [0, 0, 0, 1, 1, 2], [0], [0]>} : vector<4x8x8xf32>, vector<4x8x8xf32>, vector<4x8x8xf32> -> vector<4x8x8xf32>
    "tpu.trace_stop"() : () -> ()
    %61 = tpu.transpose %60, [1, 0, 2] : vector<4x8x8xf32> -> vector<8x4x8xf32>
    %62 = vector.shape_cast %61 : vector<8x4x8xf32> to vector<8x32xf32>
    %c0_22 = arith.constant 0 : index
    %c0_23 = arith.constant 0 : index
    %63 = vector.load %arg7[%c0_22, %c0_23] : memref<32x32xf32, #tpu.memory_space<vmem>>, vector<32x32xf32>
    %cst_24 = arith.constant dense<0.000000e+00> : vector<8x32xf32>
    %64 = tpu.matmul %62, %63, %cst_24 {dimension_numbers = #tpu.dot_dimension_numbers<[1], [0], [0], [1], [0, 0, 1, 1], [], []>} : vector<8x32xf32>, vector<32x32xf32>, vector<8x32xf32> -> vector<8x32xf32>
    %c0_25 = arith.constant 0 : index
    %c0_26 = arith.constant 0 : index
    %65 = vector.load %arg8[%c0_25, %c0_26] : memref<1x32xf32, #tpu.memory_space<vmem>>, vector<1x32xf32>
    %66 = vector.broadcast %65 : vector<1x32xf32> to vector<8x32xf32>
    %67 = arith.addf %64, %66 : vector<8x32xf32>
    %68 = arith.addf %1, %67 : vector<8x32xf32>
    %c0_27 = arith.constant 0 : index
    %c0_28 = arith.constant 0 : index
    %69 = vector.load %arg9[%c0_27, %c0_28] : memref<1x32xf32, #tpu.memory_space<vmem>>, vector<1x32xf32>
    %c0_29 = arith.constant 0 : index
    %c0_30 = arith.constant 0 : index
    %70 = vector.load %arg10[%c0_29, %c0_30] : memref<1x32xf32, #tpu.memory_space<vmem>>, vector<1x32xf32>
    %cst_31 = arith.constant dense<0.000000e+00> : vector<8xf32>
    %71 = vector.multi_reduction <add>, %68, %cst_31 [1] : vector<8x32xf32> to vector<8xf32>
    %72 = vector.shape_cast %71 : vector<8xf32> to vector<8x1xf32>
    %cst_32 = arith.constant 3.200000e+01 : f32
    %73 = vector.broadcast %cst_32 : f32 to vector<8x1xf32>
    %74 = arith.divf %72, %73 : vector<8x1xf32>
    %75 = vector.broadcast %74 : vector<8x1xf32> to vector<8x32xf32>
    %76 = arith.subf %68, %75 : vector<8x32xf32>
    %77 = arith.mulf %76, %76 : vector<8x32xf32>
    %cst_33 = arith.constant dense<0.000000e+00> : vector<8xf32>
    %78 = vector.multi_reduction <add>, %77, %cst_33 [1] : vector<8x32xf32> to vector<8xf32>
    %79 = vector.shape_cast %78 : vector<8xf32> to vector<8x1xf32>
    %cst_34 = arith.constant 3.200000e+01 : f32
    %80 = vector.broadcast %cst_34 : f32 to vector<8x1xf32>
    %81 = arith.divf %79, %80 : vector<8x1xf32>
    %82 = vector.broadcast %74 : vector<8x1xf32> to vector<8x32xf32>
    %83 = arith.subf %68, %82 : vector<8x32xf32>
    %cst_35 = arith.constant 9.99999974E-6 : f32
    %84 = vector.broadcast %cst_35 : f32 to vector<8x1xf32>
    %85 = arith.addf %81, %84 : vector<8x1xf32>
    %86 = math.rsqrt %85 : vector<8x1xf32>
    %87 = vector.broadcast %86 : vector<8x1xf32> to vector<8x32xf32>
    %88 = arith.mulf %83, %87 : vector<8x32xf32>
    %89 = vector.broadcast %69 : vector<1x32xf32> to vector<8x32xf32>
    %90 = arith.mulf %88, %89 : vector<8x32xf32>
    %91 = vector.broadcast %70 : vector<1x32xf32> to vector<8x32xf32>
    %92 = arith.addf %90, %91 : vector<8x32xf32>
    %c0_36 = arith.constant 0 : index
    %c0_37 = arith.constant 0 : index
    %93 = vector.load %arg11[%c0_36, %c0_37] : memref<32x64xf32, #tpu.memory_space<vmem>>, vector<32x64xf32>
    %cst_38 = arith.constant dense<0.000000e+00> : vector<8x64xf32>
    %94 = tpu.matmul %92, %93, %cst_38 {dimension_numbers = #tpu.dot_dimension_numbers<[1], [0], [0], [1], [0, 0, 1, 1], [], []>} : vector<8x32xf32>, vector<32x64xf32>, vector<8x64xf32> -> vector<8x64xf32>
    %c0_39 = arith.constant 0 : index
    %c0_40 = arith.constant 0 : index
    %95 = vector.load %arg12[%c0_39, %c0_40] : memref<1x64xf32, #tpu.memory_space<vmem>>, vector<1x64xf32>
    %96 = vector.broadcast %95 : vector<1x64xf32> to vector<8x64xf32>
    %97 = arith.addf %94, %96 : vector<8x64xf32>
    %cst_41 = arith.constant 5.000000e-01 : f32
    %98 = vector.broadcast %cst_41 : f32 to vector<8x64xf32>
    %99 = arith.mulf %98, %97 : vector<8x64xf32>
    %cst_42 = arith.constant 2.000000e+00 : f32
    %100 = math.sqrt %cst_42 : f32
    %cst_43 = arith.constant 1.000000e+00 : f32
    %101 = arith.divf %cst_43, %100 : f32
    %102 = vector.broadcast %101 : f32 to vector<8x64xf32>
    %103 = arith.mulf %97, %102 : vector<8x64xf32>
    %104 = math.erf %103 : vector<8x64xf32>
    %cst_44 = arith.constant 1.000000e+00 : f32
    %105 = vector.broadcast %cst_44 : f32 to vector<8x64xf32>
    %106 = arith.addf %105, %104 : vector<8x64xf32>
    %107 = arith.mulf %99, %106 : vector<8x64xf32>
    %c0_45 = arith.constant 0 : index
    %c0_46 = arith.constant 0 : index
    %108 = vector.load %arg13[%c0_45, %c0_46] : memref<64x32xf32, #tpu.memory_space<vmem>>, vector<64x32xf32>
    %cst_47 = arith.constant dense<0.000000e+00> : vector<8x32xf32>
    %109 = tpu.matmul %107, %108, %cst_47 {dimension_numbers = #tpu.dot_dimension_numbers<[1], [0], [0], [1], [0, 0, 1, 1], [], []>} : vector<8x64xf32>, vector<64x32xf32>, vector<8x32xf32> -> vector<8x32xf32>
    %c0_48 = arith.constant 0 : index
    %c0_49 = arith.constant 0 : index
    %110 = vector.load %arg14[%c0_48, %c0_49] : memref<1x32xf32, #tpu.memory_space<vmem>>, vector<1x32xf32>
    %111 = vector.broadcast %110 : vector<1x32xf32> to vector<8x32xf32>
    %112 = arith.addf %109, %111 : vector<8x32xf32>
    %113 = arith.addf %68, %112 : vector<8x32xf32>
    %c0_50 = arith.constant 0 : index
    %c0_51 = arith.constant 0 : index
    %c0_52 = arith.constant 0 : index
    %114 = vector.load %arg15[%c0_50, %c0_51, %c0_52] : memref<1x8x32xf32, #tpu.memory_space<vmem>>, vector<1x8x32xf32>
    %115 = vector.shape_cast %114 : vector<1x8x32xf32> to vector<8x32xf32>
    %116 = vector.shape_cast %113 : vector<8x32xf32> to vector<1x8x32xf32>
    tpu.vector_store %arg15[%c0_50, %c0_51, %c0_52], %116 {strides = array<i32>} : memref<1x8x32xf32, #tpu.memory_space<vmem>>, vector<1x8x32xf32>,
    return
  }
  func.func @transform_0(%arg0: i32, %arg1: i32) -> (i32, i32, i32) {
    %c0_i32 = arith.constant 0 : i32
    %c0_i32_0 = arith.constant 0 : i32
    %c0_i32_1 = arith.constant 0 : i32
    return %arg0, %c0_i32, %c0_i32_0 : i32, i32, i32
  }
  func.func @transform_1(%arg0: i32, %arg1: i32) -> (i32, i32) {
    %c0_i32 = arith.constant 0 : i32
    %c0_i32_0 = arith.constant 0 : i32
    %c0_i32_1 = arith.constant 0 : i32
    return %c0_i32, %c0_i32_0 : i32, i32
  }
  func.func @transform_2(%arg0: i32, %arg1: i32) -> (i32, i32) {
    %c0_i32 = arith.constant 0 : i32
    %c0_i32_0 = arith.constant 0 : i32
    %c0_i32_1 = arith.constant 0 : i32
    return %c0_i32, %c0_i32_0 : i32, i32
  }
  func.func @transform_3(%arg0: i32, %arg1: i32) -> (i32, i32) {
    %c0_i32 = arith.constant 0 : i32
    %c0_i32_0 = arith.constant 0 : i32
    %c0_i32_1 = arith.constant 0 : i32
    return %c0_i32, %c0_i32_0 : i32, i32
  }
  func.func @transform_4(%arg0: i32, %arg1: i32) -> (i32, i32) {
    %c0_i32 = arith.constant 0 : i32
    %c0_i32_0 = arith.constant 0 : i32
    %c0_i32_1 = arith.constant 0 : i32
    return %c0_i32, %c0_i32_0 : i32, i32
  }
  func.func @transform_5(%arg0: i32, %arg1: i32) -> (i32, i32) {
    %c0_i32 = arith.constant 0 : i32
    %c0_i32_0 = arith.constant 0 : i32
    %c0_i32_1 = arith.constant 0 : i32
    return %c0_i32, %c0_i32_0 : i32, i32
  }
  func.func @transform_6(%arg0: i32, %arg1: i32) -> (i32, i32) {
    %c0_i32 = arith.constant 0 : i32
    %c0_i32_0 = arith.constant 0 : i32
    %c0_i32_1 = arith.constant 0 : i32
    return %c0_i32, %c0_i32_0 : i32, i32
  }
  func.func @transform_7(%arg0: i32, %arg1: i32) -> (i32, i32) {
    %c0_i32 = arith.constant 0 : i32
    %c0_i32_0 = arith.constant 0 : i32
    %c0_i32_1 = arith.constant 0 : i32
    return %c0_i32, %c0_i32_0 : i32, i32
  }
  func.func @transform_8(%arg0: i32, %arg1: i32) -> (i32, i32) {
    %c0_i32 = arith.constant 0 : i32
    %c0_i32_0 = arith.constant 0 : i32
    %c0_i32_1 = arith.constant 0 : i32
    return %c0_i32, %c0_i32_0 : i32, i32
  }
  func.func @transform_9(%arg0: i32, %arg1: i32) -> (i32, i32) {
    %c0_i32 = arith.constant 0 : i32
    %c0_i32_0 = arith.constant 0 : i32
    %c0_i32_1 = arith.constant 0 : i32
    return %c0_i32, %c0_i32_0 : i32, i32
  }
  func.func @transform_10(%arg0: i32, %arg1: i32) -> (i32, i32) {
    %c0_i32 = arith.constant 0 : i32
    %c0_i32_0 = arith.constant 0 : i32
    %c0_i32_1 = arith.constant 0 : i32
    return %c0_i32, %c0_i32_0 : i32, i32
  }
  func.func @transform_11(%arg0: i32, %arg1: i32) -> (i32, i32) {
    %c0_i32 = arith.constant 0 : i32
    %c0_i32_0 = arith.constant 0 : i32
    %c0_i32_1 = arith.constant 0 : i32
    return %c0_i32, %c0_i32_0 : i32, i32
  }
  func.func @transform_12(%arg0: i32, %arg1: i32) -> (i32, i32) {
    %c0_i32 = arith.constant 0 : i32
    %c0_i32_0 = arith.constant 0 : i32
    %c0_i32_1 = arith.constant 0 : i32
    return %c0_i32, %c0_i32_0 : i32, i32
  }
  func.func @transform_13(%arg0: i32, %arg1: i32) -> (i32, i32, i32) {
    %c0_i32 = arith.constant 0 : i32
    %c0_i32_0 = arith.constant 0 : i32
    return %arg0, %arg1, %c0_i32 : i32, i32, i32
  }
}

</mosaic_0001>

<bundles_post_ra>
// kernel: tpu_custom_call.1
= control target key start
LH: loop header
LB: loop body
LE: loop exit
PB: predicated region body
PF: predicated region fallthrough
CT: control target
= control target key end

     0   :  { %s2494_s0 = inlined_call_operand.hbm [shape: f32[2,8,32], index: 0, kind: input, shape index: {}]   ;;  %s2495_s1 = inlined_call_operand.hbm [shape: f32[1,32], index: 1, kind: input, shape index: {}]   ;;  %s2496_s2 = inlined_call_operand.vmem [shape: f32[1,32], index: 2, kind: input, shape index: {}]   ;;  %s2497_s3 = inlined_call_operand.vmem [shape: f32[32,96], index: 3, kind: input, shape index: {}]   ;;  %s2498_s4 = inlined_call_operand.vmem [shape: f32[1,96], index: 4, kind: input, shape index: {}]   ;;  %s2499_s5 = inlined_call_operand.vmem [shape: f32[32,32], index: 5, kind: input, shape index: {}]   ;;  %s2500_s6 = inlined_call_operand.vmem [shape: f32[1,32], index: 6, kind: input, shape index: {}]   ;;  %s2501_s7 = inlined_call_operand.vmem [shape: f32[1,32], index: 7, kind: input, shape index: {}]   ;;  %s2502_s8 = inlined_call_operand.vmem [shape: f32[1,32], index: 8, kind: input, shape index: {}]   ;;  %s2503_s9 = inlined_call_operand.vmem [shape: f32[32,64], index: 9, kind: input, shape index: {}]   ;;  %s2504_s10 = inlined_call_operand.vmem [shape: f32[1,64], index: 10, kind: input, shape index: {}]   ;;  %s2505_s11 = inlined_call_operand.vmem [shape: f32[64,32], index: 11, kind: input, shape index: {}]   ;;  %s2506_s12 = inlined_call_operand.vmem [shape: f32[1,32], index: 12, kind: input, shape index: {}]   ;;  %s2507_s13 = inlined_call_operand.hbm [shape: f32[2,8,32], index: 13, kind: output, shape index: {}]  }
   0x1   :  { %2514 = sst [smem:[#allocation15_spill]] %s2495_s1 }
   0x2   :  { %2515 = sst [smem:[#allocation16_spill]] %s2504_s10 }
   0x3   :  { %2516 = sst [smem:[#allocation17_spill]] %s2505_s11 }
   0x4   :  { %2517 = sst [smem:[#allocation18_spill]] %s2506_s12 }
   0x5   :  { %2518 = sst [smem:[#allocation19_spill]] %s2507_s13 }
   0x6   :  { %18 = vsyncpa [#allocation3], 0 }
   0x7   :  { %20 = vsyncpa [#allocation3 + $0x1], 0 }
   0x8   :  { %21 = vsyncpa [#allocation6], 0 }
   0x9   :  { %22 = vsyncpa [#allocation4], 0 }
   0xa   :  { %24 = vsyncpa [#allocation4 + $0x1], 0  ;;  %s2010_s25 = smov 0   ;;  %s2012_s26 = smov 0  }
   0xb   :  { %s2014_s27 = smov 0   ;;  %s2016_s28 = smov 0  }
   0xc   :  { %s2018_s29 = smov 0   ;;  %s2020_s30 = smov 0  }
   0xd LB: > { %2519 = sst [smem:[#allocation11_spill]] %s1907_s25  ;;  %s1613_s14 = sadd.s32 4294967295, %s1927_s30   ;;  %s1927_s30 = sphi %s2020_s30, %s30_s30   ;;  %s1923_s29 = sphi %s2018_s29, %s2543_s29   ;;  %s1919_s28 = sphi %s2016_s28, %s2542_s28   ;;  %s1915_s27 = sphi %s2014_s27, %s2541_s27   ;;  %s1911_s26 = sphi %s2012_s26, %s2540_s26   ;;  %s1907_s25 = sphi %s2010_s25, %s2539_s25  }
   0xe   : > { %2520 = sst [smem:[#allocation12_spill]] %s1919_s28  ;;  %s1614_s15 = sadd.s32 4294967294, %s1927_s30  }
   0xf   : > { %p62_p0 = scmp.ne.s32.totalorder %s1911_s26, %s1907_s25  ;;  %p2044_p1 = scmp.eq.s32.totalorder %s1613_s14, 0 }
  0x10   : > { %p2048_p2 = scmp.eq.s32.totalorder %s1613_s14, 1  ;;  %p346_p3 = scmp.eq.s32.totalorder %s1614_s15, 1 }
  0x11   : > { %p2054_p4 = por %p2044_p1, %p62_p0  ;;  %p1615_p5 = scmp.ge.s32.totalorder %s1927_s30, 1 }
  0x12   : > { %p2059_p6 = por %p346_p3, %p62_p0  ;;  %p353_p7 = scmp.lt.s32.totalorder %s1927_s30, 3 }
  0x13   : > { %s2526_s1 = sld [smem:[#allocation15_spill]]  ;;  %p1617_p9 = scmp.ge.s32.totalorder %s1927_s30, 2 }
  0x14   : > { %s2524_s19 = scalar_select %p2059_p6, 1, 0 }
  0x15   : > { %p2067_p8 = pnand %p1615_p5, %p353_p7  ;;  %s1929_s24 = smov [#allocation5]  }
  0x16   : > { %2525 = sst [smem:[#allocation13_spill]] %s2524_s19  ;;  %s367_s14 = sshll.u32 %s1929_s24, 4  ;;  %s368_s14 = int_to_ptr.vmem [resolvable:$true] %s367_s14 }
  0x17   : > { %p1654_p10 = pneg %p2067_p8  ;;  %s42_s15 = sadd.s32 1, %s1923_s29 }
  0x18   : > { %p44_p12 = scmp.ge.s32.totalorder %s42_s15, 2  ;;  %s49_s20 = sadd.s32 1, %s1915_s27 }
  0x19   : > { %s365_s22 = sshll.u32 %s2526_s1, 4  ;;  %p1655_p11 = pnand %p1654_p10, %p2044_p1  ;;  %s366_s22 = int_to_ptr.hbm [resolvable:$true] %s365_s22 }
  0x1a   : > { %p56_p13 = scmp.ne.s32.totalorder %s1915_s27, %s1911_s26  ;;  %p57_p0 = scmp.eq.s32.totalorder %s1927_s30, 0 }
  0x1b   : > { %1657 = dma.hbm_to_vmem [thread:$0]  (!%p1655_p11), %s366_s22, 16, %s368_s14, [#allocation6]  }
  0x1c   : > { %s2545_s15 = smov (%p44_p12, %s42_s15), 0  ;;  %p2083_p3 = por %p57_p0, %p56_p13 }
  0x1d   : > { %p2089_p5 = por %p2048_p2, %p56_p13  ;;  %s46_s1 = ssub.s32 %s1923_s29, %s2545_s15 }
  0x1e   : > { %p1667_p7 = scmp.lt.s32.totalorder %s1927_s30, 2  ;;  %p47_p10 = scmp.eq.s32.totalorder %s46_s1, 0 }
  0x1f   : > { %s2529_s24 = scalar_select %p2089_p5, 1, 0 }
  0x20   : > { %s411_s22 = sand.u32 1, %s1915_s27   ;;  %s1619_s25 = sshll.u32 %s1923_s29, 3 }
  0x21   : > { %2530 = sst [smem:[#allocation14_spill]] %s2529_s24  ;;  %s1618_s14 = sshll.u32 %s411_s22, 3 }
  0x22   : > { %s2098_s19 = scalar_select %p47_p10, %s1915_s27, %s49_s20  }
  0x23   : > { %s419_s28 = scalar_lea.hbm %s2494_s0, %s1619_s25  ;;  %s415_s11 = scalar_lea.vmem [#allocation2], %s1618_s14 }
  0x24   : > { %s423_s10 = sshll.u32 %s415_s11, 4  ;;  %s421_s17 = sshll.u32 %s419_s28, 4  ;;  %s424_s10 = int_to_ptr.vmem [resolvable:$true] %s423_s10  ;;  %s422_s17 = int_to_ptr.hbm [resolvable:$true] %s421_s17 }
  0x25   : > { %p1659_p2 = pnand %p1667_p7, %p2083_p3  ;;  %s412_s24 = scalar_lea.sflag [#allocation3], %s411_s22 }
  0x26   : > { %432 = sbr.rel (%p2067_p8) target bundleno = 1992 (0x7c8), region = 72  ;;  %s2109_s1 = sand.u32 (!%p2067_p8), 1, %s1911_s26  }
  0x27   : > { %1661 = dma.hbm_to_vmem [thread:$0]  (!%p1659_p2), %s422_s17, 128, %s424_s10, %s412_s24  }
  0x28   : > { %s1621_s12 = sshll.u32 (!%p2067_p8), %s2109_s1, 3  ;;  %s435_s13 = scalar_lea.sflag (!%p2067_p8), [#allocation3], %s2109_s1 }
  0x29   : > { %s438_s11 = scalar_lea.vmem (!%p2067_p8), [#allocation2], %s1621_s12 }
  0x2b   : > { %1894 = dma.done.wait (%p2054_p4), %s435_s13, 128  }
  0x2c   : > { %1896 = vsyncadd (%p2054_p4), %s435_s13, 4294967168 }
  0x2d   : > { %1898 = dma.done.wait (%p2044_p1), [#allocation6], 16  }
  0x2e   : > { %1900 = vsyncadd (%p2044_p1), [#allocation6], 4294967280  ;;  %vm490_vm0 = vcmask 261120   ;;  %v2123_v0 = vld [vmem:[%s438_s11] sm:$0xff]  ;;  %v1930_v2 = vmov 32.0   ;;  %v530_v3 = vld [vmem:[%s2497_s3 + $0x10] sm:$0xff] }
  0x2f   : > { %v491_v1 = vsel %vm490_vm0, %v2123_v0, 0.0  ;;  %1757 = vrcp.f32 %v1930_v2  ;;  %v531_v4 = vld [vmem:[%s2497_s3 + $0x18] sm:$0xff]  ;;  %s1931_s16 = smov 96   ;;  %v528_v7 = vld [vmem:[%s2497_s3] sm:$0xff]  ;;  %v529_v8 = vld [vmem:[%s2497_s3 + $0x8] sm:$0xff]  ;;  %s1932_s11 = smov 104  }
  0x30   : > { %492 = vadd.xlane.f32.xlu0 %v491_v1  ;;  %v1729_v5 = vpack.i.bf16 %v530_v3, %v531_v4  ;;  %590 = vmatpush.msra.mxu1 %v531_v4  ;;  %v1734_v10 = vpack.i.bf16 %v528_v7, %v529_v8  ;;  %v1751_v26 = vld [vmem:[%s2498_s4] ss:$0 sm:$0xff]  ;;  %v1749_v36 = vld [vmem:[#allocation5] ss:$0 sm:$0xff]  ;;  %s1933_s10 = smov 112   ;;  %s1934_s25 = smov 120  }
  0x31   : > { %551 = vrot.lane.b32.xlu2 %v1751_v26, %s1931_s16  ;;  %v1750_v39 = vld [vmem:[%s2496_s2] ss:$0 sm:$0xff]  ;;  %v1935_v50 = vmov 1983009808   ;;  %v1936_v53 = vmov 1934713408  }
  0x32   : > { %1730 = vrot.lane.b32.xlu1 %v1729_v5, %s1931_s16  ;;  %591 = vmatpush.msra.mxu1 %v530_v3  ;;  %v615_v51 = vunpack.c.l.s4 %v1935_v50  ;;  %v639_v54 = vunpack.c.l.s4 %v1936_v53  ;;  %vm610_vm5 = vcmask 1047556   ;;  %vm962_vm6 = vcmask 64512   ;;  %s1937_s28 = smov 16   ;;  %s1938_s18 = smov 8  }
  0x33   : > { %vm1326_vm7 = vcmask 130048   ;;  %vm1328_vm8 = vcmask 195584   ;;  %s2533_s20 = sld [smem:[#allocation12_spill]] }
  0x34   : > { %592 = vmatpush.msra.mxu1 %v529_v8  ;;  %v2164_v58 = vunpack.c.0.s8 %v615_v51  ;;  %v2177_v4 = vunpack.c.0.s8 %v639_v54  ;;  %s2534_s14 = sld [smem:[#allocation18_spill]] }
  0x35   : > { %v1758_v6 = vpop.eup %1757 }
  0x36   : > { %v495_v9 = vmul.f32 32.0, %v1758_v6  ;;  %593 = vmatpush.msra.mxu1 %v528_v7  ;;  %vm499_vm1 = vweird.f32 %v1758_v6 }
  0x38   : > { %v496_v11 = vsub.f32 1.0, %v495_v9 }
  0x39   : > { %s1643_s21 = sshll.u32 %s2533_s20, 3  ;;  %s1508_s20 = scalar_lea.sflag [#allocation4], %s2109_s1 }
  0x3a   : > { %1735 = vrot.lane.b32.xlu1 %v1734_v10, %s1931_s16  ;;  %v497_v12 = vmul.f32 %v1758_v6, %v496_v11 }
  0x3c   : > { %v498_v13 = vadd.f32 %v1758_v6, %v497_v12 }
  0x3e   : > { %v2141_v14 = vsel %vm499_vm1, %v1758_v6, %v498_v13  ;;  %vm1481_vm1 = vcmask 523264  }
  0x8b   : > { %v552_v42 = vpop.permute.xlu2 %551 }
  0xa3   : > { %v493_v15 = vpop.xlane.xlu0 %492 }
  0xa4   : > { %v501_v16 = vmul.f32 %v2141_v14, %v493_v15  ;;  %v1731_v20 = vpop.permute.xlu1 %1730 }
  0xa5   : > { %v1732_v21 = vunpack.i.l.bf16 %v1731_v20  ;;  %v1733_v22 = vunpack.i.h.bf16 %v1731_v20 }
  0xa6   : > { %v502_v17 = vsub.f32 %v2123_v0, %v501_v16 }
  0xa7   : > { %569 = vmatpush.msra.mxu0 %v1732_v21 }
  0xa8   : > { %v503_v18 = vmul.f32 %v502_v17, %v502_v17 }
  0xa9   : > { %570 = vmatpush.msra.mxu0 %v1733_v22 }
  0xaa   : > { %v504_v19 = vsel %vm490_vm0, %v503_v18, 0.0 }
  0xab   : > { %505 = vadd.xlane.f32.xlu0 %v504_v19 }
  0xac   : > { %v1736_v23 = vpop.permute.xlu1 %1735 }
  0xad   : > { %v1737_v24 = vunpack.i.l.bf16 %v1736_v23  ;;  %v1738_v25 = vunpack.i.h.bf16 %v1736_v23 }
  0xaf   : > { %571 = vmatpush.msra.mxu0 %v1737_v24 }
  0xb1   : > { %572 = vmatpush.msra.mxu0 %v1738_v25 }
 0x11e   : > { %v506_v27 = vpop.xlane.xlu0 %505 }
 0x11f   : > { %v507_v28 = vmul.f32 %v506_v27, %v2141_v14 }
 0x121   : > { %v508_v29 = vadd.f32 1e-05, %v507_v28 }
 0x123   : > { %1759 = vrsqrt.f32 %v508_v29  ;;  %vm515_vm3 = vweird.f32 %v508_v29 }
 0x129   : > { %v1760_v30 = vpop.eup %1759 }
 0x12a   : > { %v510_v31 = vmul.f32 %v1760_v30, %v508_v29  ;;  %vm516_vm2 = vweird.f32 %v1760_v30 }
 0x12b   : > { %vm517_vm4 = vmor %vm515_vm3, %vm516_vm2 }
 0x12c   : > { %v511_v32 = vmul.f32 %v1760_v30, %v510_v31 }
 0x12e   : > { %v512_v33 = vmul.f32 0.5, %v511_v32 }
 0x130   : > { %v513_v34 = vsub.f32 1.5, %v512_v33 }
 0x132   : > { %v514_v35 = vmul.f32 %v1760_v30, %v513_v34 }
 0x134   : > { %v518_v37 = vsel %vm517_vm4, %v1760_v30, %v514_v35 }
 0x135   : > { %v519_v38 = vmul.f32 %v518_v37, %v502_v17 }
 0x137   : > { %v523_v40 = vmul.f32 %v1749_v36, %v519_v38 }
 0x139   : > { %v527_v41 = vadd.f32 %v1750_v39, %v523_v40 }
 0x13b   : > { %1624 = vmatmul.msk.f32.vlgmr.msra.gmra.mxu0 %vm490_vm0, %v527_v41  ;;  %1625 = vmatmul.msk.f32.vlgmr.msra.gmra.mxu1 %vm490_vm0, %v527_v41 }
 0x1b8   : > { %v574_v43 = vpop.f32.mrf.mxu0  ;;  %v595_v45 = vpop.f32.mrf.mxu1 }
 0x1b9   : > { %v2156_v44 = vadd.f32 %v574_v43, %v552_v42  ;;  %v596_v46 = vadd.f32 %v1751_v26, %v595_v45 }
 0x1bb   : > { %727 = vrot.lane.b32.xlu1 %v2156_v44, %s1932_s11  ;;  %724 = vrot.lane.b32.xlu0 %v2156_v44, %s1933_s10  ;;  %v598_v47 = vmul.f32 0.35355338, %v596_v46  ;;  %v732_v61 = vrot.slane %v2156_v44, 4 }
 0x1bc   : > { %721 = vrot.lane.b32.xlu2 %v2156_v44, %s1934_s25 }
 0x1bd   : > { %v612_v25 = vrot.slane %v598_v47, 4 }
 0x1c3   : > { %603 = vrot.lane.b32.xlu1 %v598_v47, %s1933_s10 }
 0x1c4   : > { %600 = vrot.lane.b32.xlu2 %v598_v47, %s1934_s25  ;;  %s2531_s25 = sld [smem:[#allocation16_spill]] }
 0x1cc   : > { %606 = vrot.lane.b32.xlu2 %v598_v47, %s1932_s11  ;;  %s2535_s11 = sld [smem:[#allocation19_spill]] }
 0x216   : > { %v2161_v48 = vpop.permute.xlu2 %721 }
 0x217   : > { %v744_v55 = vrot.slane %v2161_v48, 4 }
 0x21e   : > { %v601_v49 = vpop.permute.xlu2 %600 }
 0x21f   : > { %v624_v57 = vrot.slane %v601_v49, 4 }
 0x226   : > { %v607_v52 = vpop.permute.xlu2 %606 }
 0x227   : > { %v622_v56 = vrot.slane %v607_v52, 4  ;;  %v625_v2 = vsel %vm610_vm5, %v607_v52, %v624_v57 }
 0x228   : > { %v633_v13 = vperm.slane %v625_v2, %v2164_v58 }
 0x229   : > { %v623_v6 = vsel %vm610_vm5, %v622_v56, %v601_v49 }
 0x22a   : > { %v629_v16 = vperm.slane %v623_v6, %v2164_v58  ;;  %v646_v31 = vrot.slane %v633_v13, 4 }
 0x22c   : > { %v634_v30 = vrot.slane %v629_v16, 4 }
 0x22d   : > { %v2166_v59 = vpop.permute.xlu1 %727  ;;  %v2168_v60 = vpop.permute.xlu0 %724 }
 0x22e   : > { %v742_v62 = vrot.slane %v2166_v59, 4  ;;  %v745_v63 = vsel %vm610_vm5, %v2166_v59, %v744_v55  ;;  %v730_v1 = vrot.slane %v2168_v60, 4  ;;  %v733_v5 = vsel %vm610_vm5, %v2168_v60, %v732_v61 }
 0x22f   : > { %v753_v3 = vperm.slane %v745_v63, %v2164_v58  ;;  %v741_v9 = vperm.slane %v733_v5, %v2164_v58 }
 0x230   : > { %v743_v7 = vsel %vm610_vm5, %v742_v62, %v2161_v48  ;;  %v731_v8 = vsel %vm610_vm5, %v730_v1, %v2156_v44 }
 0x231   : > { %v749_v10 = vperm.slane %v743_v7, %v2164_v58  ;;  %v766_v11 = vrot.slane %v753_v3, 4  ;;  %v737_v12 = vperm.slane %v731_v8, %v2164_v58  ;;  %v768_v15 = vrot.slane %v741_v9, 4 }
 0x233   : > { %v754_v17 = vrot.slane %v749_v10, 4  ;;  %v756_v18 = vrot.slane %v737_v12, 4  ;;  %v767_v19 = vsel %vm610_vm5, %v766_v11, %v741_v9  ;;  %v769_v20 = vsel %vm610_vm5, %v753_v3, %v768_v15 }
 0x234   : > { %v773_v21 = vperm.slane %v767_v19, %v2177_v4  ;;  %v777_v24 = vperm.slane %v769_v20, %v2177_v4 }
 0x235   : > { %v755_v22 = vsel %vm610_vm5, %v754_v17, %v737_v12  ;;  %v757_v23 = vsel %vm610_vm5, %v749_v10, %v756_v18  ;;  %v604_v26 = vpop.permute.xlu1 %603 }
 0x236   : > { %v761_v27 = vperm.slane %v755_v22, %v2177_v4  ;;  %v765_v28 = vperm.slane %v757_v23, %v2177_v4  ;;  %v609_v29 = vrot.slane %v604_v26, 4  ;;  %v784_v32 = vrot.slane %v777_v24, 4 }
 0x237   : > { %v613_v33 = vsel %vm610_vm5, %v604_v26, %v612_v25  ;;  %v782_v35 = vrot.slane %v773_v21, 4 }
 0x238   : > { %v780_v34 = vrot.slane %v765_v28, 4  ;;  %v611_v36 = vsel %vm610_vm5, %v609_v29, %v598_v47  ;;  %v621_v37 = vperm.slane %v613_v33, %v2164_v58  ;;  %v785_v38 = vsel %vm610_vm5, 0.0, %v784_v32 }
 0x239   : > { %v797_v39 = vsel %vm610_vm5, %v784_v32, %v773_v21  ;;  %v617_v40 = vperm.slane %v611_v36, %v2164_v58  ;;  %v778_v41 = vrot.slane %v761_v27, 4  ;;  %v802_v42 = vrot.slane %v785_v38, 4 }
 0x23a   : > { %v647_v43 = vsel %vm610_vm5, %v646_v31, %v621_v37  ;;  %v648_v45 = vrot.slane %v621_v37, 4  ;;  %v781_v46 = vsel %vm610_vm5, 0.0, %v780_v34  ;;  %v786_v54 = vsel %vm610_vm5, %v780_v34, %v761_v27 }
 0x23b   : > { %v635_v49 = vsel %vm610_vm5, %v634_v30, %v617_v40  ;;  %v636_v50 = vrot.slane %v617_v40, 4  ;;  %v653_v47 = vperm.slane %v647_v43, %v2177_v4  ;;  %v779_v51 = vsel %vm610_vm5, 0.0, %v778_v41 }
 0x23c   : > { %v641_v52 = vperm.slane %v635_v49, %v2177_v4  ;;  %v649_v53 = vsel %vm610_vm5, %v633_v13, %v648_v45  ;;  %v791_v55 = vrot.slane %v781_v46, 4  ;;  %v790_v62 = vperm.slane %v786_v54, %v2164_v58 }
 0x23d   : > { %v637_v56 = vsel %vm610_vm5, %v629_v16, %v636_v50  ;;  %v657_v57 = vperm.slane %v649_v53, %v2177_v4  ;;  %v662_v61 = vrot.slane %v653_v47, 4  ;;  %v783_v63 = vsel %vm610_vm5, 0.0, %v782_v35 }
 0x23e   : > { %v645_v1 = vperm.slane %v637_v56, %v2177_v4  ;;  %v792_v2 = vsel %vm610_vm5, %v791_v55, %v779_v51  ;;  %v801_v3 = vperm.slane %v797_v39, %v2164_v58  ;;  %v658_v5 = vrot.slane %v641_v52, 4 }
 0x23f   : > { %v664_v6 = vrot.slane %v657_v57, 4  ;;  %v796_v7 = vperm.slane %v792_v2, %v2164_v58  ;;  %v803_v8 = vsel %vm610_vm5, %v802_v42, %v783_v63  ;;  %v810_v11 = vrot.slane %v790_v62, 4 }
 0x240   : > { %v660_v9 = vrot.slane %v645_v1, 4  ;;  %v807_v10 = vperm.slane %v803_v8, %v2164_v58  ;;  %v822_v12 = vrot.slane %v801_v3, 4  ;;  %v663_v13 = vsel %vm610_vm5, 0.0, %v662_v61 }
 0x241   : > { %v665_v15 = vsel %vm610_vm5, 0.0, %v664_v6  ;;  %v677_v16 = vsel %vm610_vm5, %v664_v6, %v653_v47  ;;  %v808_v17 = vrot.slane %v796_v7, 4  ;;  %v811_v21 = vsel %vm610_vm5, %v796_v7, %v810_v11 }
 0x242   : > { %v661_v18 = vsel %vm610_vm5, 0.0, %v660_v9  ;;  %v681_v19 = vperm.slane %v677_v16, %v2164_v58  ;;  %v682_v20 = vrot.slane %v665_v15, 4  ;;  %v819_v22 = vperm.slane %v811_v21, %v2177_v4 }
 0x243   : > { %v823_v23 = vsel %vm610_vm5, %v807_v10, %v822_v12  ;;  %v809_v24 = vsel %vm610_vm5, %v808_v17, %v790_v62  ;;  %v820_v25 = vrot.slane %v807_v10, 4  ;;  %v666_v29 = vsel %vm610_vm5, %v660_v9, %v641_v52 }
 0x244   : > { %v683_v26 = vsel %vm610_vm5, %v682_v20, %v663_v13  ;;  %v831_v27 = vperm.slane %v823_v23, %v2177_v4  ;;  %v815_v28 = vperm.slane %v809_v24, %v2177_v4  ;;  %v659_v31 = vsel %vm610_vm5, 0.0, %v658_v5 }
 0x245   : > { %v821_v30 = vsel %vm610_vm5, %v820_v25, %v801_v3  ;;  %v670_v32 = vperm.slane %v666_v29, %v2164_v58  ;;  %v671_v33 = vrot.slane %v661_v18, 4  ;;  %v687_v37 = vperm.slane %v683_v26, %v2164_v58 }
 0x246   : > { %v836_v34 = vrot.slane %v831_v27, 4  ;;  %v827_v35 = vperm.slane %v821_v30, %v2177_v4  ;;  %v834_v36 = vrot.slane %v815_v28, 4  ;;  %v702_v40 = vrot.slane %v681_v19, 4 }
 0x247   : > { %v672_v38 = vsel %vm610_vm5, %v671_v33, %v659_v31  ;;  %v690_v39 = vrot.slane %v670_v32, 4  ;;  %v700_v49 = vrot.slane %v687_v37, 4  ;;  %v838_v61 = vrot.slane %v819_v22, 4 }
 0x248   : > { %v837_v41 = vsel %vm610_vm5, %v836_v34, %v819_v22  ;;  %v832_v42 = vrot.slane %v827_v35, 4  ;;  %v676_v43 = vperm.slane %v672_v38, %v2164_v58  ;;  %v835_v45 = vsel %vm610_vm5, %v827_v35, %v834_v36 }
 0x249   : > { %1630 = vmatpush.xpose.msk.msra.mxu2 %vm962_vm6, %v837_v41  ;;  %v703_v46 = vsel %vm610_vm5, %v687_v37, %v702_v40  ;;  %v701_v54 = vsel %vm610_vm5, %v700_v49, %v681_v19  ;;  %v839_v3 = vsel %vm610_vm5, %v831_v27, %v838_v61  ;;  %v1744_v17 = vpack.i.bf16 %v2166_v59, %v2168_v60 }
 0x24a   : > { %v833_v50 = vsel %vm610_vm5, %v832_v42, %v815_v28  ;;  %v691_v47 = vsel %vm610_vm5, %v676_v43, %v690_v39  ;;  %v711_v51 = vperm.slane %v703_v46, %v2177_v4  ;;  %v688_v52 = vrot.slane %v676_v43, 4 }
 0x24b   : > { %1626 = vmatpush.xpose.msk.msra.mxu3 %vm962_vm6, %v833_v50  ;;  %v699_v53 = vperm.slane %v691_v47, %v2177_v4  ;;  %v707_v57 = vperm.slane %v701_v54, %v2177_v4  ;;  %v1739_v18 = vpack.i.bf16 %v2161_v48, %v2156_v44 }
 0x24c   : > { %v716_v55 = vrot.slane %v711_v51, 4  ;;  %v689_v56 = vsel %vm610_vm5, %v688_v52, %v670_v32 }
 0x24d   : > { %v695_v62 = vperm.slane %v689_v56, %v2177_v4  ;;  %v712_v1 = vrot.slane %v707_v57, 4  ;;  %v718_v7 = vrot.slane %v699_v53, 4 }
 0x24e   : > { %v717_v63 = vsel %vm610_vm5, %v716_v55, %v699_v53 }
 0x24f   : > { %1628 = vmatpush.xpose.msk.msrb.mxu3 %vm962_vm6, %v835_v45  ;;  %1631 = vmatmul.msk.f32.vlgmr.msra.gmra.mxu2 %vm962_vm6, %v717_v63  ;;  %v713_v2 = vsel %vm610_vm5, %v712_v1, %v695_v62  ;;  %v714_v5 = vrot.slane %v695_v62, 4  ;;  %v719_v8 = vsel %vm610_vm5, %v711_v51, %v718_v7 }
 0x250   : > { %1627 = vmatmul.msk.f32.vlgmr.msra.gmra.mxu3 %vm962_vm6, %v713_v2 }
 0x251   : > { %v715_v6 = vsel %vm610_vm5, %v707_v57, %v714_v5 }
 0x253   : > { %1632 = vmatpush.xpose.msk.msra.mxu3 %vm962_vm6, %v839_v3 }
 0x258   : > { %1629 = vmatmul.msk.f32.vlgmr.msrb.gmra.mxu3 %vm962_vm6, %v715_v6 }
 0x260   : > { %1633 = vmatmul.msk.f32.vlgmr.msra.gmra.mxu3 %vm962_vm6, %v719_v8 }
 0x2d2   : > { %v1038_v9 = vpop.f32.mrf.mxu2 }
 0x2d3   : > { %v1073_v10 = vsel %vm962_vm6, %v1038_v9, -inf  ;;  %v986_v11 = vpop.f32.mrf.mxu3 }
 0x2d4   : > { %1074 = vmax.xlane.f32.xlu1 %v1073_v10  ;;  %v1067_v12 = vsel %vm962_vm6, %v986_v11, -inf }
 0x2d5   : > { %1068 = vmax.xlane.f32.xlu0 %v1067_v12 }
 0x2db   : > { %v1012_v13 = vpop.f32.mrf.mxu3 }
 0x2dc   : > { %v1070_v19 = vsel %vm962_vm6, %v1012_v13, -inf }
 0x2e3   : > { %v1064_v15 = vpop.f32.mrf.mxu3 }
 0x2e4   : > { %v1076_v16 = vsel %vm962_vm6, %v1064_v15, -inf }
 0x2e5   : > { %1077 = vmax.xlane.f32.xlu2 %v1076_v16 }
 0x2e9   : > { %1745 = vrot.lane.b32.xlu0 %v1744_v17, %s1931_s16 }
 0x2ed   : > { %1740 = vrot.lane.b32.xlu1 %v1739_v18, %s1931_s16  ;;  %1071 = vmax.xlane.f32.xlu2 %v1070_v19  ;;  %s1939_s16 = smov 24  }
 0x347   : > { %v1075_v20 = vpop.xlane.xlu1 %1074 }
 0x348   : > { %v1081_v21 = vsub.f32 %v1038_v9, %v1075_v20  ;;  %v1069_v59 = vpop.xlane.xlu0 %1068 }
 0x349   : > { %v1079_v26 = vsub.f32 %v986_v11, %v1069_v59 }
 0x34a   : > { %v1087_v22 = vmul.f32 1.442695, %v1081_v21 }
 0x34b   : > { %v1083_v32 = vmul.f32 1.442695, %v1079_v26 }
 0x34c   : > { %1761 = vpow2.f32 %v1087_v22 }
 0x352   : > { %v2277_v23 = vpop.eup %1761 }
 0x353   : > { %v1097_v24 = vsel %vm962_vm6, %v2277_v23, 0.0 }
 0x354   : > { %1098 = vadd.xlane.f32.xlu2 %v1097_v24 }
 0x358   : > { %v1078_v60 = vpop.xlane.xlu2 %1077 }
 0x359   : > { %v1082_v25 = vsub.f32 %v1064_v15, %v1078_v60 }
 0x35b   : > { %v1089_v44 = vmul.f32 1.442695, %v1082_v25  ;;  %v1746_v48 = vpop.permute.xlu0 %1745 }
 0x35c   : > { %v1748_v27 = vunpack.i.h.bf16 %v1746_v48  ;;  %v1747_v28 = vunpack.i.l.bf16 %v1746_v48 }
 0x35d   : > { %1763 = vpow2.f32 %v1089_v44 }
 0x35e   : > { %v864_v29 = vrot.slane %v1748_v27, 4  ;;  %v852_v30 = vrot.slane %v1747_v28, 4  ;;  %1765 = vpow2.f32 %v1083_v32 }
 0x35f   : > { %v1741_v31 = vpop.permute.xlu1 %1740 }
 0x360   : > { %v1743_v33 = vunpack.i.h.bf16 %v1741_v31  ;;  %v1742_v34 = vunpack.i.l.bf16 %v1741_v31  ;;  %v1072_v35 = vpop.xlane.xlu2 %1071 }
 0x361   : > { %v1080_v42 = vsub.f32 %v1012_v13, %v1072_v35 }
 0x362   : > { %v866_v36 = vrot.slane %v1743_v33, 4  ;;  %v853_v37 = vsel %vm610_vm5, %v852_v30, %v1742_v34  ;;  %v854_v38 = vrot.slane %v1742_v34, 4  ;;  %v865_v39 = vsel %vm610_vm5, %v864_v29, %v1743_v33 }
 0x363   : > { %v859_v40 = vperm.slane %v853_v37, %v2164_v58  ;;  %v871_v41 = vperm.slane %v865_v39, %v2164_v58  ;;  %v2285_v43 = vpop.eup %1763  ;;  %v1085_v52 = vmul.f32 1.442695, %v1080_v42 }
 0x364   : > { %v855_v45 = vsel %vm610_vm5, %v1747_v28, %v854_v38  ;;  %v867_v46 = vsel %vm610_vm5, %v1748_v27, %v866_v36  ;;  %v1100_v53 = vsel %vm962_vm6, %v2285_v43, 0.0  ;;  %v2299_v2 = vpop.eup %1765 }
 0x365   : > { %v863_v49 = vperm.slane %v855_v45, %v2164_v58  ;;  %v875_v50 = vperm.slane %v867_v46, %v2164_v58  ;;  %v876_v47 = vrot.slane %v871_v41, 4  ;;  %v878_v51 = vrot.slane %v859_v40, 4  ;;  %1101 = vadd.xlane.f32.xlu2 %v1100_v53 }
 0x366   : > { %1767 = vpow2.f32 %v1085_v52  ;;  %v1091_v13 = vsel %vm962_vm6, %v2299_v2, 0.0 }
 0x367   : > { %v877_v54 = vsel %vm610_vm5, %v876_v47, %v859_v40  ;;  %v879_v55 = vsel %vm610_vm5, %v871_v41, %v878_v51  ;;  %v888_v56 = vrot.slane %v875_v50, 4  ;;  %v890_v57 = vrot.slane %v863_v49, 4 }
 0x368   : > { %v883_v61 = vperm.slane %v877_v54, %v2177_v4  ;;  %v887_v62 = vperm.slane %v879_v55, %v2177_v4 }
 0x369   : > { %v889_v63 = vsel %vm610_vm5, %v888_v56, %v863_v49  ;;  %v891_v1 = vsel %vm610_vm5, %v875_v50, %v890_v57 }
 0x36a   : > { %v895_v3 = vperm.slane %v889_v63, %v2177_v4  ;;  %v899_v5 = vperm.slane %v891_v1, %v2177_v4  ;;  %v900_v6 = vrot.slane %v883_v61, 4  ;;  %v902_v7 = vrot.slane %v887_v62, 4 }
 0x36c   : > { %v903_v8 = vsel %vm610_vm5, 0.0, %v902_v7  ;;  %v904_v9 = vrot.slane %v895_v3, 4  ;;  %v906_v10 = vrot.slane %v899_v5, 4  ;;  %v908_v11 = vsel %vm610_vm5, %v902_v7, %v883_v61  ;;  %v1768_v15 = vpop.eup %1767 }
 0x36d   : > { %v913_v12 = vrot.slane %v903_v8, 4  ;;  %v901_v16 = vsel %vm610_vm5, 0.0, %v900_v6  ;;  %v912_v18 = vperm.slane %v908_v11, %v2164_v58  ;;  %1092 = vadd.xlane.f32.xlu2 %v1091_v13  ;;  %v1094_v21 = vsel %vm962_vm6, %v1768_v15, 0.0 }
 0x36e   : > { %v907_v17 = vsel %vm610_vm5, 0.0, %v906_v10  ;;  %v919_v19 = vsel %vm610_vm5, %v906_v10, %v895_v3  ;;  %1095 = vadd.xlane.f32.xlu0 %v1094_v21  ;;  %v905_v59 = vsel %vm610_vm5, 0.0, %v904_v9 }
 0x36f   : > { %v924_v20 = vrot.slane %v907_v17, 4  ;;  %v914_v22 = vsel %vm610_vm5, %v913_v12, %v901_v16  ;;  %v923_v24 = vperm.slane %v919_v19, %v2164_v58  ;;  %v932_v25 = vrot.slane %v912_v18, 4 }
 0x370   : > { %v918_v60 = vperm.slane %v914_v22, %v2164_v58 }
 0x371   : > { %v925_v26 = vsel %vm610_vm5, %v924_v20, %v905_v59  ;;  %v944_v44 = vrot.slane %v923_v24, 4 }
 0x372   : > { %v929_v48 = vperm.slane %v925_v26, %v2164_v58  ;;  %v933_v27 = vsel %vm610_vm5, %v918_v60, %v932_v25  ;;  %v930_v28 = vrot.slane %v918_v60, 4 }
 0x373   : > { %v941_v29 = vperm.slane %v933_v27, %v2177_v4 }
 0x374   : > { %v945_v30 = vsel %vm610_vm5, %v929_v48, %v944_v44  ;;  %v931_v31 = vsel %vm610_vm5, %v930_v28, %v912_v18  ;;  %v942_v32 = vrot.slane %v929_v48, 4 }
 0x375   : > { %v953_v33 = vperm.slane %v945_v30, %v2177_v4  ;;  %v960_v34 = vrot.slane %v941_v29, 4  ;;  %v937_v35 = vperm.slane %v931_v31, %v2177_v4 }
 0x376   : > { %v943_v36 = vsel %vm610_vm5, %v942_v32, %v923_v24 }
 0x377   : > { %v961_v37 = vsel %vm610_vm5, %v953_v33, %v960_v34  ;;  %v949_v38 = vperm.slane %v943_v36, %v2177_v4  ;;  %v956_v39 = vrot.slane %v937_v35, 4  ;;  %v958_v40 = vrot.slane %v953_v33, 4 }
 0x378   : > { %1198 = vmatpush.msrb.mxu3 %v961_v37 }
 0x379   : > { %v957_v41 = vsel %vm610_vm5, %v949_v38, %v956_v39  ;;  %v959_v42 = vsel %vm610_vm5, %v958_v40, %v941_v29  ;;  %v954_v45 = vrot.slane %v949_v38, 4 }
 0x37a   : > { %1152 = vmatpush.msrb.mxu1 %v957_v41  ;;  %1175 = vmatpush.msrb.mxu2 %v959_v42 }
 0x37b   : > { %v955_v46 = vsel %vm610_vm5, %v954_v45, %v937_v35 }
 0x37c   : > { %1129 = vmatpush.msrb.mxu0 %v955_v46 }
 0x3c7   : > { %v1099_v49 = vpop.xlane.xlu2 %1098 }
 0x3c8   : > { %1769 = vrcp.f32 %v1099_v49 }
 0x3ce   : > { %v1770_v50 = vpop.eup %1769 }
 0x3cf   : > { %v1109_v47 = vmul.f32 %v1770_v50, %v2277_v23 }
 0x3d1   : > { %1636 = vmatmul.msk.f32.vlgmr.msrb.gmra.mxu2 %vm962_vm6, %v1109_v47 }
 0x3d8   : > { %v1102_v51 = vpop.xlane.xlu2 %1101 }
 0x3d9   : > { %1771 = vrcp.f32 %v1102_v51 }
 0x3df   : > { %v1772_v52 = vpop.eup %1771 }
 0x3e0   : > { %v1110_v53 = vmul.f32 %v1772_v52, %v2285_v43  ;;  %v1093_v54 = vpop.xlane.xlu2 %1092 }
 0x3e1   : > { %v1096_v55 = vpop.xlane.xlu0 %1095  ;;  %1773 = vrcp.f32 %v1093_v54 }
 0x3e2   : > { %1775 = vrcp.f32 %v1096_v55  ;;  %1637 = vmatmul.msk.f32.vlgmr.msrb.gmra.mxu3 %vm962_vm6, %v1110_v53 }
 0x3e7   : > { %v1774_v56 = vpop.eup %1773 }
 0x3e8   : > { %v1776_v57 = vpop.eup %1775  ;;  %v1107_v61 = vmul.f32 %v1774_v56, %v2299_v2 }
 0x3e9   : > { %v1108_v62 = vmul.f32 %v1776_v57, %v1768_v15 }
 0x3ea   : > { %1634 = vmatmul.msk.f32.vlgmr.msrb.gmra.mxu0 %vm962_vm6, %v1107_v61 }
 0x3eb   : > { %1635 = vmatmul.msk.f32.vlgmr.msrb.gmra.mxu1 %vm962_vm6, %v1108_v62 }
 0x454   : > { %v1177_v23 = vpop.f32.mrf.mxu2 }
 0x455   : > { %v1203_v1 = vrot.slane %v1177_v23, 4 }
 0x465   : > { %v1200_v63 = vpop.f32.mrf.mxu3 }
 0x466   : > { %v1215_v3 = vrot.slane %v1200_v63, 4 }
 0x467   : > { %v1131_v43 = vpop.f32.mrf.mxu0 }
 0x468   : > { %v1204_v5 = vsel %vm610_vm5, %v1203_v1, %v1131_v43  ;;  %v1205_v6 = vrot.slane %v1131_v43, 4  ;;  %v1154_v7 = vpop.f32.mrf.mxu1 }
 0x469   : > { %v1210_v8 = vperm.slane %v1204_v5, %v2164_v58  ;;  %v1216_v9 = vsel %vm610_vm5, %v1215_v3, %v1154_v7  ;;  %v1217_v10 = vrot.slane %v1154_v7, 4  ;;  %v1332_v5 = vld [vmem:[%s2499_s5 + $0x10] sm:$0xff]  ;;  %v1330_v7 = vld [vmem:[%s2499_s5] sm:$0xff] }
 0x46a   : > { %v1206_v2 = vsel %vm610_vm5, %v1177_v23, %v1205_v6  ;;  %v1222_v11 = vperm.slane %v1216_v9, %v2164_v58  ;;  %v1331_v6 = vld [vmem:[%s2499_s5 + $0x8] sm:$0xff] }
 0x46b   : > { %v1214_v12 = vperm.slane %v1206_v2, %v2164_v58  ;;  %v1229_v13 = vrot.slane %v1210_v8, 4  ;;  %v1218_v15 = vsel %vm610_vm5, %v1200_v63, %v1217_v10 }
 0x46c   : > { %v1226_v16 = vperm.slane %v1218_v15, %v2164_v58  ;;  %v1227_v17 = vrot.slane %v1222_v11, 4 }
 0x46d   : > { %v1241_v18 = vrot.slane %v1214_v12, 4  ;;  %v1230_v19 = vsel %vm610_vm5, %v1222_v11, %v1229_v13  ;;  %v1752_v13 = vld [vmem:[%s2500_s6] ss:$0 sm:$0xff] }
 0x46e   : > { %v1228_v20 = vsel %vm610_vm5, %v1227_v17, %v1210_v8  ;;  %v1238_v21 = vperm.slane %v1230_v19, %v2177_v4  ;;  %v1239_v22 = vrot.slane %v1226_v16, 4 }
 0x46f   : > { %v1234_v24 = vperm.slane %v1228_v20, %v2177_v4  ;;  %v1242_v59 = vsel %vm610_vm5, %v1226_v16, %v1241_v18 }
 0x470   : > { %v1240_v60 = vsel %vm610_vm5, %v1239_v22, %v1214_v12  ;;  %v1250_v25 = vperm.slane %v1242_v59, %v2177_v4  ;;  %v1253_v26 = vrot.slane %v1238_v21, 4  ;;  %v1397_v59 = vld [vmem:[%s2503_s9 + $0x18] sm:$0xff] }
 0x471   : > { %v1246_v44 = vperm.slane %v1240_v60, %v2177_v4  ;;  %v1251_v48 = vrot.slane %v1234_v24, 4  ;;  %1417 = vmatpush.msra.mxu1 %v1397_v59  ;;  %v1395_v60 = vld [vmem:[%s2503_s9 + $0x8] sm:$0xff] }
 0x472   : > { %v1254_v27 = vsel %vm610_vm5, 0.0, %v1253_v26  ;;  %v1257_v28 = vrot.slane %v1250_v25, 4  ;;  %v1259_v29 = vsel %vm610_vm5, %v1253_v26, %v1234_v24  ;;  %v1394_v25 = vld [vmem:[%s2503_s9] sm:$0xff] }
 0x473   : > { %v1255_v30 = vrot.slane %v1246_v44, 4  ;;  %v1264_v31 = vrot.slane %v1254_v27, 4  ;;  %v1263_v32 = vperm.slane %v1259_v29, %v2164_v58  ;;  %v1252_v33 = vsel %vm610_vm5, 0.0, %v1251_v48 }
 0x474   : > { %v1258_v34 = vsel %vm610_vm5, 0.0, %v1257_v28  ;;  %v1270_v35 = vsel %vm610_vm5, %v1257_v28, %v1246_v44 }
 0x475   : > { %v1275_v36 = vrot.slane %v1258_v34, 4  ;;  %v1265_v37 = vsel %vm610_vm5, %v1264_v31, %v1252_v33  ;;  %v1274_v38 = vperm.slane %v1270_v35, %v2164_v58  ;;  %v1256_v39 = vsel %vm610_vm5, 0.0, %v1255_v30  ;;  %v1753_v33 = vld [vmem:[%s2501_s7] ss:$0 sm:$0xff] }
 0x476   : > { %v1269_v40 = vperm.slane %v1265_v37, %v2164_v58  ;;  %v1283_v41 = vrot.slane %v1263_v32, 4 }
 0x477   : > { %v1276_v42 = vsel %vm610_vm5, %v1275_v36, %v1256_v39  ;;  %v1295_v45 = vrot.slane %v1274_v38, 4 }
 0x478   : > { %v1280_v46 = vperm.slane %v1276_v42, %v2164_v58  ;;  %v1281_v49 = vrot.slane %v1269_v40, 4  ;;  %v1284_v50 = vsel %vm610_vm5, %v1269_v40, %v1283_v41 }
 0x479   : > { %v1292_v56 = vperm.slane %v1284_v50, %v2177_v4 }
 0x47a   : > { %v1296_v47 = vsel %vm610_vm5, %v1280_v46, %v1295_v45  ;;  %v1282_v51 = vsel %vm610_vm5, %v1281_v49, %v1263_v32  ;;  %v1293_v52 = vrot.slane %v1280_v46, 4 }
 0x47b   : > { %v1304_v53 = vperm.slane %v1296_v47, %v2177_v4  ;;  %v1288_v54 = vperm.slane %v1282_v51, %v2177_v4  ;;  %v1311_v3 = vrot.slane %v1292_v56, 4 }
 0x47c   : > { %v1294_v55 = vsel %vm610_vm5, %v1293_v52, %v1274_v38  ;;  %v1755_v38 = vld [vmem:[%s2531_s25] ss:$0 sm:$0xff]  ;;  %s1519_s25 = scalar_lea.hbm %s2535_s11, %s1643_s21 }
 0x47d   : > { %v1309_v57 = vrot.slane %v1304_v53, 4  ;;  %v1300_v61 = vperm.slane %v1294_v55, %v2177_v4  ;;  %v1307_v58 = vrot.slane %v1288_v54, 4  ;;  %v1312_v43 = vsel %vm610_vm5, %v1304_v53, %v1311_v3  ;;  %v1333_v4 = vld [vmem:[%s2499_s5 + $0x18] sm:$0xff]  ;;  %s1523_s23 = sshll.u32 %s1519_s25, 4  ;;  %s1524_s23 = int_to_ptr.hbm [resolvable:$true] %s1523_s23 }
 0x47e   : > { %1353 = vmatpush.msra.mxu0 %v1333_v4  ;;  %s1855_s24 = sshra.s32 %s1524_s23, 4  ;;  %s1856_s24 = int_to_ptr.hbm [resolvable:$true] %s1855_s24 }
 0x47f   : > { %v1310_v62 = vsel %vm610_vm5, %v1309_v57, %v1292_v56  ;;  %v1305_v23 = vrot.slane %v1300_v61, 4  ;;  %v1308_v63 = vsel %vm610_vm5, %v1300_v61, %v1307_v58  ;;  %s1857_s22 = scalar_lea.hbm %s1856_s24, 8  ;;  %p1862_p11 = scmp.lt.s32.totalorder %s1856_s24, %s2535_s11 }
 0x480   : > { %1318 = vrot.lane.b32.xlu2 %v1310_v62, %s1937_s28  ;;  %1314 = vrot.lane.b32.xlu1 %v1308_v63, %s1938_s18  ;;  %s486_s28 = scalar_lea.vmem [#allocation7], %s1621_s12  ;;  %p1858_p1 = scmp.ne.s32.totalorder %s1856_s24, %s1857_s22 }
 0x481   : > { %v1306_v1 = vsel %vm610_vm5, %v1305_v23, %v1288_v54  ;;  %1354 = vmatpush.msra.mxu0 %v1332_v5  ;;  %s1521_s18 = sshll.u32 %s486_s28, 4  ;;  %s1861_s12 = scalar_lea.hbm %s2535_s11, 16  ;;  %s1522_s18 = int_to_ptr.vmem [resolvable:$true] %s1521_s18 }
 0x482   : > { %p1859_p4 = pnand %p1858_p1, %p2089_p5  ;;  %p1863_p12 = scmp.lt.s32.totalorder %s1861_s12, %s1857_s22 }
 0x483   : > { %1355 = vmatpush.msra.mxu0 %v1331_v6 }
 0x484   : > { %p1860_p8 = pneg %p1859_p4  ;;  %p1864_p13 = por %p1863_p12, %p1862_p11 }
 0x485   : > { %1356 = vmatpush.msra.mxu0 %v1330_v7 }
 0x486   : > { %p1865_p0 = pnand %p1864_p13, %p1860_p8 }
 0x488   : > { %1322 = vrot.lane.b32.xlu1 %v1312_v43, %s1939_s16  ;;  %s2532_s16 = sld [smem:[#allocation17_spill]] }
 0x48e   : > { %v1476_v46 = vld [vmem:[%s2532_s16 + $0x38] sm:$0xff]  ;;  %v1475_v47 = vld [vmem:[%s2532_s16 + $0x30] sm:$0xff]  ;;  %v1474_v53 = vld [vmem:[%s2532_s16 + $0x28] sm:$0xff] }
 0x48f   : > { %1493 = vmatpush.msra.mxu2 %v1476_v46  ;;  %v1473_v56 = vld [vmem:[%s2532_s16 + $0x20] sm:$0xff]  ;;  %v1472_v61 = vld [vmem:[%s2532_s16 + $0x18] sm:$0xff]  ;;  %v1471_v23 = vld [vmem:[%s2532_s16 + $0x10] sm:$0xff] }
 0x490   : > { %v1469_v43 = vld [vmem:[%s2532_s16] sm:$0xff] }
 0x491   : > { %1494 = vmatpush.msra.mxu2 %v1475_v47 }
 0x493   : > { %1495 = vmatpush.msra.mxu2 %v1474_v53 }
 0x495   : > { %1496 = vmatpush.msra.mxu2 %v1473_v56 }
 0x497   : > { %1497 = vmatpush.msra.mxu2 %v1472_v61 }
 0x499   : > { %1498 = vmatpush.msra.mxu2 %v1471_v23 }
 0x4da   : > { %v1319_v10 = vpop.permute.xlu2 %1318 }
 0x4f2   : > { %v1315_v8 = vpop.permute.xlu1 %1314 }
 0x4f3   : > { %v1325_v9 = vsel %vm962_vm6, %v1306_v1, %v1315_v8  ;;  %v1470_v1 = vld [vmem:[%s2532_s16 + $0x8] sm:$0xff] }
 0x4f4   : > { %v1327_v11 = vsel %vm1326_vm7, %v1325_v9, %v1319_v10  ;;  %1499 = vmatpush.msra.mxu2 %v1470_v1 }
 0x4f6   : > { %1500 = vmatpush.msra.mxu2 %v1469_v43 }
 0x4fa   : > { %v1323_v2 = vpop.permute.xlu1 %1322 }
 0x4fb   : > { %v1329_v12 = vsel %vm1328_vm8, %v1327_v11, %v1323_v2 }
 0x4fc   : > { %1638 = vmatmul.msk.f32.vlgmr.msra.gmra.mxu0 %vm490_vm0, %v1329_v12 }
 0x579   : > { %v1358_v15 = vpop.f32.mrf.mxu0 }
 0x57a   : > { %v1359_v16 = vadd.f32 %v1752_v13, %v1358_v15 }
 0x57c   : > { %v2395_v17 = vadd.f32 %v1359_v16, %v2123_v0  ;;  %v1396_v0 = vld [vmem:[%s2503_s9 + $0x10] sm:$0xff] }
 0x57d   : > { %1418 = vmatpush.msra.mxu1 %v1396_v0 }
 0x57e   : > { %v1364_v18 = vsel %vm490_vm0, %v2395_v17, 0.0 }
 0x57f   : > { %1365 = vadd.xlane.f32.xlu1 %v1364_v18  ;;  %1419 = vmatpush.msra.mxu1 %v1395_v60 }
 0x581   : > { %1420 = vmatpush.msra.mxu1 %v1394_v25 }
 0x5f2   : > { %v1366_v19 = vpop.xlane.xlu1 %1365 }
 0x5f3   : > { %v1367_v20 = vmul.f32 %v1366_v19, %v2141_v14 }
 0x5f5   : > { %v1368_v21 = vsub.f32 %v2395_v17, %v1367_v20 }
 0x5f7   : > { %v1369_v22 = vmul.f32 %v1368_v21, %v1368_v21 }
 0x5f9   : > { %v1370_v24 = vsel %vm490_vm0, %v1369_v22, 0.0 }
 0x5fa   : > { %1371 = vadd.xlane.f32.xlu2 %v1370_v24 }
 0x66d   : > { %v1372_v26 = vpop.xlane.xlu2 %1371 }
 0x66e   : > { %v1373_v44 = vmul.f32 %v1372_v26, %v2141_v14  ;;  %v1754_v14 = vld [vmem:[%s2502_s8] ss:$0 sm:$0xff] }
 0x670   : > { %v1374_v48 = vadd.f32 1e-05, %v1373_v44 }
 0x672   : > { %1777 = vrsqrt.f32 %v1374_v48  ;;  %vm1381_vm10 = vweird.f32 %v1374_v48 }
 0x678   : > { %v1778_v27 = vpop.eup %1777 }
 0x679   : > { %v1376_v28 = vmul.f32 %v1778_v27, %v1374_v48  ;;  %vm1382_vm9 = vweird.f32 %v1778_v27  ;;  %v1756_v48 = vld [vmem:[%s2534_s14] ss:$0 sm:$0xff] }
 0x67a   : > { %vm1383_vm11 = vmor %vm1381_vm10, %vm1382_vm9 }
 0x67b   : > { %v1377_v29 = vmul.f32 %v1778_v27, %v1376_v28 }
 0x67d   : > { %v1378_v30 = vmul.f32 0.5, %v1377_v29 }
 0x67f   : > { %v1379_v31 = vsub.f32 1.5, %v1378_v30 }
 0x681   : > { %v1380_v32 = vmul.f32 %v1778_v27, %v1379_v31 }
 0x683   : > { %v1384_v34 = vsel %vm1383_vm11, %v1778_v27, %v1380_v32 }
 0x684   : > { %v1385_v35 = vmul.f32 %v1384_v34, %v1368_v21 }
 0x686   : > { %v1389_v36 = vmul.f32 %v1753_v33, %v1385_v35 }
 0x688   : > { %v1393_v37 = vadd.f32 %v1754_v14, %v1389_v36 }
 0x68a   : > { %1639 = vmatmul.msk.f32.vlgmr.msra.gmra.mxu1 %vm490_vm0, %v1393_v37 }
 0x707   : > { %v1422_v39 = vpop.f32.mrf.mxu1 }
 0x708   : > { %v1423_v40 = vadd.f32 %v1755_v38, %v1422_v39 }
 0x70a   : > { %v1426_v41 = vmul.f32 0.70710677, %v1423_v40  ;;  %v1425_v25 = vmul.f32 0.5, %v1423_v40 }
 0x70c   : > { %v1427_v42 = vmul.f32 %v1426_v41, %v1426_v41 }
 0x70e   : > { %v1428_v45 = vmin.f32 %v1427_v42, 16.0 }
 0x710   : > { %v1429_v49 = vmul.f32 2.1237322e-06, %v1428_v45  ;;  %v1440_v50 = vmul.f32 3.8918573e-05, %v1428_v45 }
 0x712   : > { %v1430_v51 = vadd.f32 0.00028619796, %v1429_v49  ;;  %v1441_v52 = vadd.f32 0.001143296, %v1440_v50 }
 0x714   : > { %v1431_v54 = vmul.f32 %v1430_v51, %v1428_v45  ;;  %v1442_v55 = vmul.f32 %v1441_v52, %v1428_v45 }
 0x716   : > { %v1443_v57 = vadd.f32 0.014752088, %v1442_v55  ;;  %v1432_v58 = vadd.f32 0.0036580483, %v1431_v54 }
 0x718   : > { %v1444_v62 = vmul.f32 %v1443_v57, %v1428_v45  ;;  %v1433_v3 = vmul.f32 %v1432_v58, %v1428_v45 }
 0x71a   : > { %v1445_v63 = vadd.f32 0.112945676, %v1444_v62  ;;  %v1434_v6 = vadd.f32 0.05243302, %v1433_v3 }
 0x71c   : > { %v1446_v4 = vmul.f32 %v1445_v63, %v1428_v45  ;;  %v1435_v9 = vmul.f32 %v1434_v6, %v1428_v45 }
 0x71e   : > { %v1447_v5 = vadd.f32 0.4994258, %v1446_v4  ;;  %v1436_v10 = vadd.f32 0.18741608, %v1435_v9 }
 0x720   : > { %v1448_v7 = vmul.f32 %v1447_v5, %v1428_v45  ;;  %v1437_v11 = vmul.f32 %v1436_v10, %v1428_v45 }
 0x722   : > { %v1449_v8 = vadd.f32 1.0, %v1448_v7  ;;  %v1438_v16 = vadd.f32 1.1283791, %v1437_v11 }
 0x724   : > { %1779 = vrcp.f32 %v1449_v8  ;;  %v1461_v15 = vand.u32 2147483648, %v1449_v8  ;;  %v1459_v19 = vand.u32 2147483647, %v1449_v8  ;;  %vm1455_vm13 = vweird.f32 %v1449_v8 }
 0x725   : > { %v1439_v22 = vmul.f32 %v1438_v16, %v1426_v41 }
 0x726   : > { %v1462_v21 = vor.u32 1.1754944e-38, %v1461_v15  ;;  %vm1460_vm15 = vcmp.eq.f32.partialorder %v1459_v19, 8.507059e+37 }
 0x72a   : > { %v1780_v2 = vpop.eup %1779 }
 0x72b   : > { %v1451_v12 = vmul.f32 %v1780_v2, %v1449_v8  ;;  %vm1456_vm12 = vweird.f32 %v1780_v2 }
 0x72c   : > { %vm1457_vm14 = vmor %vm1455_vm13, %vm1456_vm12 }
 0x72d   : > { %v1452_v13 = vsub.f32 1.0, %v1451_v12 }
 0x72f   : > { %v1453_v18 = vmul.f32 %v1780_v2, %v1452_v13 }
 0x731   : > { %v1454_v20 = vadd.f32 %v1780_v2, %v1453_v18 }
 0x733   : > { %v1458_v24 = vsel %vm1457_vm14, %v1780_v2, %v1454_v20 }
 0x734   : > { %v1463_v59 = vsel %vm1460_vm15, %v1462_v21, %v1458_v24 }
 0x735   : > { %v1464_v0 = vmul.f32 %v1463_v59, %v1439_v22 }
 0x737   : > { %v1640_v60 = vclamps-f32 %v1464_v0, 1.0 }
 0x739   : > { %v1467_v26 = vadd.f32 1.0, %v1640_v60 }
 0x73b   : > { %v1468_v44 = vmul.f32 %v1467_v26, %v1425_v25 }
 0x73d   : > { %1641 = vmatmul.msk.f32.vlgmr.msra.gmra.mxu2 %vm1481_vm1, %v1468_v44 }
 0x7c0   : > { %v1502_v27 = vpop.f32.mrf.mxu2 }
 0x7c1   : > { %v1503_v28 = vadd.f32 %v1756_v48, %v1502_v27 }
 0x7c3   : > { %v1505_v29 = vadd.f32 %v1503_v28, %v2395_v17 }
 0x7c5   : > { %1506 = vst.msk [vmem:[%s486_s28] sm:$0xff] %vm490_vm0, %v1505_v29 }
 0x7c6   : > { %1868 = shalt.err (!%p1865_p0)
}
 0x7c7   : > { %1652 = dma.vmem_to_hbm [thread:$0]  (%p2089_p5), %s1522_s18, 128, %s1524_s23, %s1508_s20  }
 0x7c8 PF: > { %s2537_s1 = sld [smem:[#allocation11_spill]]  ;;  %p1663_p3 = pnand %p1617_p9, %p2059_p6 }
 0x7ca   : > { %p1664_p7 = pneg %p1663_p3 }
 0x7ce   : > { %s1535_s28 = sand.u32 1, %s2537_s1  }
 0x7cf   : > { %s1536_s21 = scalar_lea.sflag [#allocation4], %s1535_s28 }
 0x7d0   : > { %1902 = dma.done.wait (%p1664_p7), %s1536_s21, 128  }
 0x7d1   : > { %1904 = vsyncadd (%p1664_p7), %s1536_s21, 4294967168  ;;  %s30_s30 = sadd.s32 1, %s1927_s30   ;;  %s2539_s25 = smov %s1911_s26 }
 0x7d2   : > { %p27_p10 = scmp.ge.s32.totalorder %s30_s30, 4   ;;  %s2540_s26 = smov %s1915_s27 }
 0x7d3   : > { %s2541_s27 = smov %s2098_s19  ;;  %s2542_s28 = smov %s1923_s29 }
 0x7d4   : > { %s2543_s29 = smov %s2545_s15  ;;  %29 = sbr.rel (!%p27_p10) target bundleno = 13 (0xd), region = 121 }
 0x7d9   :  { %1542 = vsyncpa [#allocation3], 1 }
 0x7da   :  { %1544 = vsyncpa [#allocation3 + $0x1], 1 }
 0x7db   :  { %1545 = vsyncpa [#allocation6], 1 }
 0x7dc   :  { %1546 = vsyncpa [#allocation4], 1 }
 0x7dd   :  { %1548 = vsyncpa [#allocation4 + $0x1], 1 }

</bundles_post_ra>
